<compile_context>
chip_gen: v7x
topology: tpu7x:2x2x1
jax: 0.10.0
libtpu: 0.0.40
codegen_flags: <defaults>
</compile_context>

<pallas_src>
import jax
import jax.numpy as jnp
from jax.experimental import pallas as pl
from jax.experimental.pallas import tpu as pltpu


def _distlinear_kernel(x_ref, v_ref, s_ref, o_ref, acc_ref):
    # x_ref: (tm, tk)   activations tile
    # v_ref: (tn, tk)   raw weight_v tile (classes x features)
    # s_ref: (1,  tn)   per-class scale = scale_factor * g * rsqrt(||v||^2)  (f32)
    # o_ref: (tm, tn)   output tile
    # acc_ref: (tm, tn) f32 accumulator scratch (lives across the k axis)
    k = pl.program_id(2)

    @pl.when(k == 0)
    def _():
        acc_ref[...] = jnp.zeros_like(acc_ref)

    # Contract the last dim of both tiles: (tm,tk) x (tn,tk) -> (tm,tn).
    # No transpose, no weight materialization; MXU-native dtype, f32 accumulation.
    acc_ref[...] += jax.lax.dot_general(
        x_ref[...], v_ref[...],
        dimension_numbers=(((1,), (1,)), ((), ())),
        preferred_element_type=jnp.float32,
    )

    @pl.when(k == pl.num_programs(2) - 1)
    def _():
        # Column scale epilogue: broadcasts (1, tn) along sublanes.
        o_ref[...] = (acc_ref[...] * s_ref[...]).astype(o_ref.dtype)


def _round_up(x, m):
    return (x + m - 1) // m * m


def dist_linear(x, weight_v, weight_g, scale_factor=10.0, *, tm=None, tn=None, tk=None):
    """Pallas implementation of distLinear.forward.

    x:        (N, indim)   (pre-normalized features, f32 or bf16)
    weight_v: (outdim, indim)
    weight_g: (outdim, 1)
    returns:  (N, outdim) float32 scores
    """
    N, D = x.shape
    C, D2 = weight_v.shape
    assert D == D2 and weight_g.shape == (C, 1)

    # ---- per-class scale, computed once from the weights only (f32, rsqrt on EUP) ----
    # Precondition (matches WeightNorm semantics): no all-zero weight_v row.
    v32 = weight_v.astype(jnp.float32)
    norm_sq = jnp.sum(v32 * v32, axis=1)                                    # (C,)
    col_scale = (jnp.asarray(scale_factor, jnp.float32)
                 * weight_g[:, 0].astype(jnp.float32)
                 * jax.lax.rsqrt(norm_sq)).reshape(1, C)                    # (1, C) lane-dense

    # ---- tile sizes: 8-multiple on N, lane-dense 128-multiples on C and D ----
    if tm is None:
        tm = min(_round_up(N, 8), 256)
    if tn is None:
        tn = min(_round_up(C, 128), 256)
    if tk is None:
        tk = min(_round_up(D, 128), 512)

    Np, Cp, Dp = _round_up(N, tm), _round_up(C, tn), _round_up(D, tk)
    x_p = jnp.pad(x, ((0, Np - N), (0, Dp - D)))
    v_p = jnp.pad(weight_v, ((0, Cp - C), (0, Dp - D)))
    s_p = jnp.pad(col_scale, ((0, 0), (0, Cp - C)))   # padded classes get scale 0 -> no NaN

    grid = (Np // tm, Cp // tn, Dp // tk)

    out = pl.pallas_call(
        _distlinear_kernel,
        out_shape=jax.ShapeDtypeStruct((Np, Cp), jnp.float32),
        grid_spec=pltpu.PrefetchScalarGridSpec(
            num_scalar_prefetch=0,
            grid=grid,
            in_specs=[
                pl.BlockSpec((tm, tk), lambda i, j, k: (i, k)),   # x
                pl.BlockSpec((tn, tk), lambda i, j, k: (j, k)),   # weight_v
                pl.BlockSpec((1, tn), lambda i, j, k: (0, j)),    # per-class scale
            ],
            out_specs=pl.BlockSpec((tm, tn), lambda i, j, k: (i, j)),
            scratch_shapes=[pltpu.VMEM((tm, tn), jnp.float32)],
        ),
        compiler_params=pltpu.CompilerParams(
            dimension_semantics=("parallel", "parallel", "arbitrary"),
        ),
        cost_estimate=pl.CostEstimate(
            flops=2 * Np * Cp * Dp,
            transcendentals=0,
            bytes_accessed=(x_p.size * x_p.dtype.itemsize
                            + v_p.size * v_p.dtype.itemsize
                            + s_p.size * 4
                            + Np * Cp * 4),
        ),
    )(x_p, v_p, s_p)

    return out[:N, :C]


def init_params(key, indim, outdim):
    """Deterministic parameter init matching the PyTorch module.

    xavier_normal_ on (outdim, indim), then WeightNorm splits it into
    v (the raw weight) and g = ||v||_2 per row (so w == v at init).
    """
    std = (2.0 / (indim + outdim)) ** 0.5
    weight_v = std * jax.random.normal(key, (outdim, indim), dtype=jnp.float32)
    weight_g = jnp.linalg.norm(weight_v, axis=1, keepdims=True)  # (outdim, 1)
    return weight_v, weight_g


def dist_linear_ref(x, weight_v, weight_g, scale_factor=10.0):
    norm = jnp.linalg.norm(weight_v.astype(jnp.float32), axis=1, keepdims=True)
    w = weight_g * weight_v.astype(jnp.float32) / norm
    return scale_factor * (x.astype(jnp.float32) @ w.T)


if __name__ == "__main__":
    key = jax.random.PRNGKey(0)
    k_x, k_w = jax.random.split(key)

    N, indim, outdim = 16, 512, 256
    x = jax.random.normal(k_x, (N, indim), dtype=jnp.float32)
    # the module expects pre-normalized features
    x = x / jnp.linalg.norm(x, axis=1, keepdims=True)
    weight_v, weight_g = init_params(k_w, indim, outdim)

    # f32 path with small explicit tiles so the (i, j, k) grid + accumulator is exercised.
    scores = dist_linear(x, weight_v, weight_g, scale_factor=10.0, tm=8, tn=128, tk=128)
    scores = jax.block_until_ready(scores)
    ref = dist_linear_ref(x, weight_v, weight_g, scale_factor=10.0)
    assert scores.shape == (N, outdim)
    assert jnp.allclose(scores, ref, atol=2e-3, rtol=2e-3), "f32 mismatch vs reference"

    # bf16 MXU-native path (bf16 activations + weights straight into the MXU, f32 acc).
    x16 = x.astype(jnp.bfloat16)
    v16 = weight_v.astype(jnp.bfloat16)
    scores16 = jax.block_until_ready(dist_linear(x16, v16, weight_g, scale_factor=10.0))
    ref16 = dist_linear_ref(x16, v16, weight_g, scale_factor=10.0)
    assert scores16.shape == (N, outdim)
    assert jnp.allclose(scores16, ref16, atol=1e-1, rtol=5e-2), "bf16 mismatch vs reference"

    print("KERNEL_OK")
</pallas_src>

<mosaic_0001>
module attributes {stable_mosaic.version = 11 : i64} {
  func.func @_distlinear_kernel(%arg0: i32, %arg1: i32, %arg2: i32, %arg3: memref<8x128xf32, #tpu.memory_space<vmem>>, %arg4: memref<128x128xf32, #tpu.memory_space<vmem>>, %arg5: memref<1x128xf32, #tpu.memory_space<vmem>>, %arg6: memref<8x128xf32, #tpu.memory_space<vmem>>, %arg7: memref<8x128xf32, #tpu.memory_space<vmem>>) attributes {dimension_semantics = [#tpu.dimension_semantics<parallel>, #tpu.dimension_semantics<parallel>, #tpu.dimension_semantics<arbitrary>], iteration_bounds = array<i64: 2, 2, 4>, scalar_prefetch = 0 : i64, scratch_operands = 1 : i64, tpu.core_type = #tpu.core_type<tc>, window_params = [{transform_indices = @transform_0, window_bounds = array<i64: 8, 128>}, {transform_indices = @transform_1, window_bounds = array<i64: 128, 128>}, {transform_indices = @transform_2, window_bounds = array<i64: 1, 128>}, {transform_indices = @transform_3, window_bounds = array<i64: 8, 128>}]} {
    %c0_i32 = arith.constant 0 : i32
    %0 = arith.cmpi eq, %arg2, %c0_i32 : i32
    %1 = arith.extui %0 : i1 to i32
    %c0_i32_0 = arith.constant 0 : i32
    %2 = arith.cmpi ne, %1, %c0_i32_0 : i32
    scf.if %2 {
      %cst_9 = arith.constant 0.000000e+00 : f32
      %12 = vector.broadcast %cst_9 : f32 to vector<8x128xf32>
      %c0_10 = arith.constant 0 : index
      %c0_11 = arith.constant 0 : index
      %13 = vector.load %arg7[%c0_10, %c0_11] : memref<8x128xf32, #tpu.memory_space<vmem>>, vector<8x128xf32>
      tpu.vector_store %arg7[%c0_10, %c0_11], %12 {strides = array<i32>} : memref<8x128xf32, #tpu.memory_space<vmem>>, vector<8x128xf32>,
    } else {
    }
    %c0 = arith.constant 0 : index
    %c0_1 = arith.constant 0 : index
    %3 = vector.load %arg7[%c0, %c0_1] : memref<8x128xf32, #tpu.memory_space<vmem>>, vector<8x128xf32>
    %c0_2 = arith.constant 0 : index
    %c0_3 = arith.constant 0 : index
    %4 = vector.load %arg3[%c0_2, %c0_3] : memref<8x128xf32, #tpu.memory_space<vmem>>, vector<8x128xf32>
    %c0_4 = arith.constant 0 : index
    %c0_5 = arith.constant 0 : index
    %5 = vector.load %arg4[%c0_4, %c0_5] : memref<128x128xf32, #tpu.memory_space<vmem>>, vector<128x128xf32>
    %cst = arith.constant dense<0.000000e+00> : vector<8x128xf32>
    %6 = tpu.matmul %4, %5, %cst {dimension_numbers = #tpu.dot_dimension_numbers<[1], [1], [0], [0], [0, 0, 1, 0], [], []>} : vector<8x128xf32>, vector<128x128xf32>, vector<8x128xf32> -> vector<8x128xf32>
    %7 = arith.addf %3, %6 : vector<8x128xf32>
    %c0_6 = arith.constant 0 : index
    %c0_7 = arith.constant 0 : index
    %8 = vector.load %arg7[%c0_6, %c0_7] : memref<8x128xf32, #tpu.memory_space<vmem>>, vector<8x128xf32>
    tpu.vector_store %arg7[%c0_6, %c0_7], %7 {strides = array<i32>} : memref<8x128xf32, #tpu.memory_space<vmem>>, vector<8x128xf32>,
    %c3_i32 = arith.constant 3 : i32
    %9 = arith.cmpi eq, %arg2, %c3_i32 : i32
    %10 = arith.extui %9 : i1 to i32
    %c0_i32_8 = arith.constant 0 : i32
    %11 = arith.cmpi ne, %10, %c0_i32_8 : i32
    scf.if %11 {
      %c0_9 = arith.constant 0 : index
      %c0_10 = arith.constant 0 : index
      %12 = vector.load %arg7[%c0_9, %c0_10] : memref<8x128xf32, #tpu.memory_space<vmem>>, vector<8x128xf32>
      %c0_11 = arith.constant 0 : index
      %c0_12 = arith.constant 0 : index
      %13 = vector.load %arg5[%c0_11, %c0_12] : memref<1x128xf32, #tpu.memory_space<vmem>>, vector<1x128xf32>
      %14 = vector.broadcast %13 : vector<1x128xf32> to vector<8x128xf32>
      %15 = arith.mulf %12, %14 : vector<8x128xf32>
      %c0_13 = arith.constant 0 : index
      %c0_14 = arith.constant 0 : index
      %16 = vector.load %arg6[%c0_13, %c0_14] : memref<8x128xf32, #tpu.memory_space<vmem>>, vector<8x128xf32>
      tpu.vector_store %arg6[%c0_13, %c0_14], %15 {strides = array<i32>} : memref<8x128xf32, #tpu.memory_space<vmem>>, vector<8x128xf32>,
    } else {
    }
    return
  }
  func.func @transform_0(%arg0: i32, %arg1: i32, %arg2: i32) -> (i32, i32) {
    %c0_i32 = arith.constant 0 : i32
    return %arg0, %arg2 : i32, i32
  }
  func.func @transform_1(%arg0: i32, %arg1: i32, %arg2: i32) -> (i32, i32) {
    %c0_i32 = arith.constant 0 : i32
    return %arg1, %arg2 : i32, i32
  }
  func.func @transform_2(%arg0: i32, %arg1: i32, %arg2: i32) -> (i32, i32) {
    %c0_i32 = arith.constant 0 : i32
    %c0_i32_0 = arith.constant 0 : i32
    return %c0_i32, %arg1 : i32, i32
  }
  func.func @transform_3(%arg0: i32, %arg1: i32, %arg2: i32) -> (i32, i32) {
    %c0_i32 = arith.constant 0 : i32
    return %arg0, %arg1 : i32, i32
  }
}

</mosaic_0001>

<bundles_post_ra>
// kernel: tpu_custom_call.1
= control target key start
LH: loop header
LB: loop body
LE: loop exit
PB: predicated region body
PF: predicated region fallthrough
CT: control target
= control target key end

     0   :  { %s1439_s0 = inlined_call_operand.hbm [shape: f32[16,512], index: 0, kind: input, shape index: {}]   ;;  %s1440_s1 = inlined_call_operand.hbm [shape: f32[256,512], index: 1, kind: input, shape index: {}]   ;;  %s1441_s2 = inlined_call_operand.vmem [shape: f32[1,256], index: 2, kind: input, shape index: {}]   ;;  %s1442_s3 = inlined_call_operand.hbm [shape: f32[16,256], index: 3, kind: output, shape index: {}]  }
   0x1   :  { %1455 = sst [smem:[#allocation21_spill]] %s1439_s0 }
   0x2   :  { %1456 = sst [smem:[#allocation22_spill]] %s1442_s3 }
   0x3   :  { %8 = vsyncpa [#allocation4], 0 }
   0x4   :  { %10 = vsyncpa [#allocation4 + $0x1], 0 }
   0x5   :  { %11 = vsyncpa [#allocation7], 0 }
   0x6   :  { %13 = vsyncpa [#allocation7 + $0x1], 0 }
   0x7   :  { %14 = vsyncpa [#allocation5], 0 }
   0x8   :  { %16 = vsyncpa [#allocation5 + $0x1], 0  ;;  %s1032_s12 = smov 0   ;;  %s1034_s13 = smov 0  }
   0x9   :  { %s1036_s14 = smov 0   ;;  %s1038_s15 = smov 0  }
   0xa   :  { %s1040_s16 = smov 0   ;;  %s1042_s17 = smov 0  }
   0xb   :  { %s1044_s18 = smov 0   ;;  %s1046_s19 = smov 0  }
   0xc   :  { %s1048_s20 = smov 0   ;;  %s1050_s21 = smov 0  }
   0xd   :  { %s1052_s22 = smov 0   ;;  %s1054_s23 = smov 0  }
   0xe   :  { %s1056_s24 = smov 0   ;;  %s1058_s25 = smov 0  }
   0xf   :  { %s1060_s26 = smov 0   ;;  %s1062_s27 = smov 0  }
  0x10 LB: > { %1457 = sst [smem:[#allocation12_spill]] %s940_s12  ;;  %s1443_s28 = sadd.s32 4294967295, %s1000_s27   ;;  %s1000_s27 = sphi %s1062_s27, %s22_s27   ;;  %s996_s26 = sphi %s1060_s26, %s1509_s26   ;;  %s992_s25 = sphi %s1058_s25, %s1508_s25   ;;  %s988_s24 = sphi %s1056_s24, %s1507_s24   ;;  %s984_s23 = sphi %s1054_s23, %s1506_s23   ;;  %s980_s22 = sphi %s1052_s22, %s1505_s22   ;;  %s976_s21 = sphi %s1050_s21, %s1504_s21   ;;  %s972_s20 = sphi %s1048_s20, %s1503_s20   ;;  %s968_s19 = sphi %s1046_s19, %s1502_s19   ;;  %s964_s18 = sphi %s1044_s18, %s1501_s18   ;;  %s960_s17 = sphi %s1042_s17, %s1500_s17   ;;  %s956_s16 = sphi %s1040_s16, %s1499_s16   ;;  %s952_s15 = sphi %s1038_s15, %s1498_s15   ;;  %s948_s14 = sphi %s1036_s14, %s1490_s14   ;;  %s944_s13 = sphi %s1034_s13, %s1497_s13   ;;  %s940_s12 = sphi %s1032_s12, %s1496_s12  }
  0x11   : > { %1458 = sst [smem:[#allocation13_spill]] %s948_s14  ;;  %s34_s30 = sadd.s32 1, %s988_s24 }
  0x12   : > { %s37_s4 = sadd.s32 1, %s992_s25  ;;  %p35_p0 = scmp.ge.s32.totalorder %s34_s30, 4 }
  0x13   : > { %s41_s5 = sadd.s32 1, %s996_s26  ;;  %s50_s6 = sadd.s32 1, %s972_s20 }
  0x14   : > { %p57_p1 = scmp.ne.s32.totalorder %s972_s20, %s968_s19  ;;  %s1511_s30 = smov (%p35_p0, %s34_s30), 0 }
  0x15   : > { %1459 = sst [smem:[#allocation14_spill]] %s1511_s30  ;;  %s1513_s4 = smov (!%p35_p0, %s37_s4), %s992_s25 }
  0x16   : > { %s46_s7 = ssub.s32 %s988_s24, %s1511_s30  ;;  %p58_p2 = scmp.eq.s32.totalorder %s1000_s27, 0 }
  0x17   : > { %p39_p3 = scmp.ge.s32.totalorder %s1513_s4, 2  ;;  %p63_p4 = scmp.ne.s32.totalorder %s968_s19, %s964_s18 }
  0x18   : > { %p1127_p5 = por %p58_p2, %p57_p1  ;;  %p1133_p6 = scmp.eq.s32.totalorder %s1443_s28, 0 }
  0x19   : > { %s1515_s4 = smov (%p39_p3, %s1513_s4), 0  ;;  %s1517_s5 = smov (!%p39_p3, %s41_s5), %s996_s26 }
  0x1a   : > { %1462 = sst [smem:[#allocation15_spill]] %s1515_s4  ;;  %p1142_p7 = por %p1133_p6, %p63_p4 }
  0x1b   : > { %s73_s11 = ssub.s32 %s992_s25, %s1515_s4  ;;  %p43_p8 = scmp.ge.s32.totalorder %s1517_s5, 2 }
  0x1c   : > { %s1463_s10 = scalar_select %p1142_p7, 1, 0 }
  0x1d   : > { %s75_s18 = sor.u32 %s73_s11, %s46_s7  ;;  %s78_s29 = sadd.s32 1, %s960_s17 }
  0x1e   : > { %p76_p9 = scmp.eq.s32.totalorder %s75_s18, 0  ;;  %s1519_s5 = smov (%p43_p8, %s1517_s5), 0 }
  0x1f   : > { %1464 = sst [smem:[#allocation16_spill]] %s1519_s5  ;;  %s45_s30 = ssub.s32 %s996_s26, %s1519_s5 }
  0x20   : > { %s1152_s28 = scalar_select %p76_p9, %s960_s17, %s78_s29  }
  0x21   : > { %p85_p10 = scmp.ne.s32.totalorder %s960_s17, %s956_s16  ;;  %s47_s4 = sor.u32 %s46_s7, %s45_s30 }
  0x22   : > { %1465 = sst [smem:[#allocation17_spill]] %s1152_s28  ;;  %p91_p11 = scmp.ne.s32.totalorder %s956_s16, %s952_s15 }
  0x23   : > { %p48_p12 = scmp.eq.s32.totalorder %s47_s4, 0  ;;  %p1162_p13 = por %p85_p10, %p58_p2 }
  0x24   : > { %p1168_p0 = por %p91_p11, %p1133_p6  ;;  %s129_s5 = sor.u32 %s73_s11, %s45_s30 }
  0x25   : > { %s1173_s28 = scalar_select %p48_p12, %s972_s20, %s50_s6  }
  0x26   : > { %s1467_s29 = scalar_select %p1168_p0, 1, 0 }
  0x27   : > { %1468 = sst [smem:[#allocation18_spill]] %s1173_s28  ;;  %p130_p1 = scmp.eq.s32.totalorder %s129_s5, 0 }
  0x28   : > { %s132_s7 = sadd.s32 1, %s948_s14  ;;  %p142_p3 = scmp.ne.s32.totalorder %s948_s14, %s944_s13 }
  0x29   : > { %s1469_s15 = sadd.s32 4294967295, %s1000_s27   ;;  %p148_p6 = scmp.ne.s32.totalorder %s944_s13, %s940_s12 }
  0x2a   : > { %p143_p4 = scmp.eq.s32.totalorder %s1469_s15, 15  ;;  %s1473_s3 = sadd.s32 4294967294, %s1000_s27  }
  0x2b   : > { %s1181_s4 = scalar_select %p130_p1, %s948_s14, %s132_s7  }
  0x2c   : > { %p1183_p2 = por %p143_p4, %p142_p3  ;;  %p149_p8 = scmp.eq.s32.totalorder %s1473_s3, 15 }
  0x2d   : > { %1470 = sst [smem:[#allocation19_spill]] %s1181_s4  ;;  %p637_p9 = scmp.lt.s32.totalorder %s1000_s27, 16 }
  0x2e   : > { %s1471_s9 = scalar_select %p1183_p2, 1, 0 }
  0x2f   : > { %s169_s30 = sand.u32 1, %s972_s20   ;;  %p1193_p10 = por %p149_p8, %p148_p6 }
  0x30   : > { %1472 = sst [smem:[#allocation20_spill]] %s1471_s9  ;;  %s524_s6 = sshll.u32 %s169_s30, 3 }
  0x31   : > { %s1474_s5 = scalar_select %p1193_p10, 1, 0 }
  0x32   : > { %s525_s11 = sshll.u32 %s996_s26, 2  ;;  %s173_s28 = scalar_lea.vmem [#allocation3], %s524_s6 }
  0x33   : > { %s178_s7 = sadd.s32 %s988_s24, %s525_s11  ;;  %s182_s4 = sshll.u32 %s173_s28, 4  ;;  %s1204_s4 = int_to_ptr.vmem [resolvable:$true] %s182_s4 }
  0x34   : > { %s526_s15 = sshll.u32 %s178_s7, 7  ;;  %s1475_s0 = sld [smem:[#allocation21_spill]] }
  0x35   : > { %p1210_p11 = pnand %p637_p9, %p1127_p5  ;;  %s543_s28 = sshll.u32 %s992_s25, 6 }
  0x36   : > { %s1216_s6 = sadd.s32 %s988_s24, %s543_s28  ;;  %p1222_p12 = pnand %p637_p9, %p1162_p13 }
  0x37   : > { %s170_s9 = scalar_lea.sflag [#allocation4], %s169_s30  ;;  %p776_p5 = pneg %p1210_p11 }
  0x3a   : > { %s1202_s12 = scalar_lea.hbm %s1475_s0, %s526_s15  ;;  %s779_s15 = scalar_lea.hbm %s1475_s0, 1024 }
  0x3b   : > { %s774_s8 = scalar_lea.hbm %s1202_s12, 128  ;;  %p780_p13 = scmp.lt.u32.totalorder %s1202_s12, %s1475_s0 }
  0x3c   : > { %p775_p3 = scmp.ne.s32.totalorder %s1202_s12, %s774_s8  ;;  %p781_p8 = scmp.lt.u32.totalorder %s779_s15, %s774_s8 }
  0x3d   : > { %p783_p1 = scmp.lt.u32.totalorder %s774_s8, %s1202_s12 }
  0x3e   : > { %p777_p4 = pnand %p776_p5, %p775_p3  ;;  %p782_p9 = por %p781_p8, %p780_p13 }
  0x40   : > { %p778_p6 = pneg %p777_p4  ;;  %p784_p10 = por %p783_p1, %p782_p9 }
  0x42   : > { %p785_p2 = pnand %p784_p10, %p778_p6 }
  0x44   : > { %788 = shalt.err (!%p785_p2)
}
  0x45   : > { %s789_s30 = scalar_lea.vmem %s1204_s4, 128  ;;  %s1002_s11 = smov [#allocation3]  }
  0x46   : > { %p790_p3 = scmp.ne.s32.totalorder %s1204_s4, %s789_s30  ;;  %s794_s7 = sshll.u32 %s1002_s11, 4  ;;  %s795_s7 = int_to_ptr.vmem [resolvable:$false] %s794_s7 }
  0x47   : > { %s796_s18 = scalar_lea.vmem %s795_s7, 256  ;;  %p797_p7 = scmp.lt.s32.totalorder %s1204_s4, %s795_s7 }
  0x48   : > { %p792_p4 = pnand %p790_p3, %p776_p5  ;;  %p798_p13 = scmp.lt.s32.totalorder %s796_s18, %s789_s30 }
  0x4a   : > { %p793_p0 = pneg %p792_p4  ;;  %p799_p8 = por %p798_p13, %p797_p7 }
  0x4c   : > { %p800_p1 = pnand %p799_p8, %p793_p0 }
  0x4e   : > { %803 = shalt.err (!%p800_p1)
}
  0x4f   : > { %629 = dma.hbm_to_vmem [thread:$0]  (!%p1210_p11), %s1202_s12, 128, %s1204_s4, %s170_s9  }
  0x50   : > { %p216_p2 = scmp.lt.s32.totalorder %s1000_s27, 17  ;;  %s189_s8 = sand.u32 1, %s960_s17  }
  0x51   : > { %s530_s15 = sshll.u32 %s1216_s6, 7  ;;  %p1478_p10 = scmp.ge.s32.totalorder %s1000_s27, 1 }
  0x52   : > { %s527_s30 = sshll.u32 %s189_s8, 7  ;;  %s1264_s7 = scalar_lea.hbm %s1440_s1, %s530_s15 }
  0x53   : > { %p1257_p5 = pnand %p1478_p10, %p216_p2  ;;  %s193_s18 = scalar_lea.vmem [#allocation6], %s527_s30 }
  0x54   : > { %s202_s12 = sshll.u32 %s193_s18, 4  ;;  %s1268_s4 = scalar_lea.sflag [#allocation7], %s189_s8  ;;  %s1266_s12 = int_to_ptr.vmem [resolvable:$true] %s202_s12 }
  0x55   : > { %s804_s6 = scalar_lea.hbm %s1264_s7, 2048  ;;  %p806_p0 = pneg %p1222_p12 }
  0x56   : > { %p805_p7 = scmp.ne.s32.totalorder %s1264_s7, %s804_s6  ;;  %s809_s11 = scalar_lea.hbm %s1440_s1, 16384 }
  0x57   : > { %p810_p9 = scmp.lt.u32.totalorder %s1264_s7, %s1440_s1  ;;  %p811_p3 = scmp.lt.u32.totalorder %s809_s11, %s804_s6 }
  0x58   : > { %p807_p11 = pnand %p806_p0, %p805_p7  ;;  %p813_p13 = scmp.lt.u32.totalorder %s804_s6, %s1264_s7 }
  0x59   : > { %p812_p4 = por %p811_p3, %p810_p9 }
  0x5a   : > { %p808_p6 = pneg %p807_p11 }
  0x5b   : > { %p814_p8 = por %p813_p13, %p812_p4 }
  0x5d   : > { %p815_p1 = pnand %p814_p8, %p808_p6 }
  0x5f   : > { %818 = shalt.err (!%p815_p1)
}
  0x60   : > { %s819_s8 = scalar_lea.vmem %s1266_s12, 2048  ;;  %s1003_s30 = smov [#allocation6]  }
  0x61   : > { %p820_p2 = scmp.ne.s32.totalorder %s1266_s12, %s819_s8  ;;  %s824_s18 = sshll.u32 %s1003_s30, 4  ;;  %s825_s18 = int_to_ptr.vmem [resolvable:$false] %s824_s18 }
  0x62   : > { %s826_s0 = scalar_lea.vmem %s825_s18, 4096  ;;  %p827_p11 = scmp.lt.s32.totalorder %s1266_s12, %s825_s18 }
  0x63   : > { %p822_p10 = pnand %p820_p2, %p806_p0  ;;  %p828_p9 = scmp.lt.s32.totalorder %s826_s0, %s819_s8 }
  0x65   : > { %p823_p7 = pneg %p822_p10  ;;  %p829_p3 = por %p828_p9, %p827_p11 }
  0x67   : > { %p830_p4 = pnand %p829_p3, %p823_p7 }
  0x69   : > { %833 = shalt.err (!%p830_p4)
}
  0x6a   : > { %s1004_s6 = smov 512   ;;  %s1005_s9 = smov 128  }
  0x6b   : > { %s1006_s15 = smov 8   ;;  %220 = sbr.rel (%p1257_p5) target bundleno = 447 (0x1bf), region = 32 }
  0x6c   : > { %632 = dma.hbm_to_vmem [thread:$0]  (!%p1222_p12), %s1264_s7, 2048, %s1266_s12, %s1268_s4, %s1004_s6, %s1005_s9, %s1006_s15  }
  0x6d   : > { %s222_s11 = sand.u32 (!%p1257_p5), 1, %s968_s19   ;;  %p1480_p0 = scmp.ne.s32.totalorder (!%p1257_p5), %s1463_s10, 0 }
  0x6e   : > { %s1299_s3 = sshll.u32 (!%p1257_p5), %s222_s11, 3  ;;  %s223_s8 = scalar_lea.sflag (!%p1257_p5), [#allocation4], %s222_s11 }
  0x6f   : > { %s226_s30 = scalar_lea.vmem (!%p1257_p5), [#allocation3], %s1299_s3 }
  0x72   : > { %927 = dma.done.wait (%p1480_p0), %s223_s8, 128  }
  0x73   : > { %929 = vsyncadd (%p1480_p0), %s223_s8, 4294967168  ;;  %s231_s14 = sand.u32 1, %s956_s16   ;;  %p1481_p12 = scmp.ne.s32.totalorder %s1467_s29, 0 }
  0x74   : > { %s533_s7 = sshll.u32 %s231_s14, 7  ;;  %s232_s12 = scalar_lea.sflag [#allocation7], %s231_s14 }
  0x75   : > { %s1307_s28 = scalar_lea.vmem [#allocation6], %s533_s7 }
  0x76   : > { %931 = dma.done.wait (%p1481_p12), %s232_s12, 2048  }
  0x77   : > { %933 = vsyncadd (%p1481_p12), %s232_s12, 4294965248  ;;  %s263_s4 = sand.u32 1, %s944_s13   ;;  %p267_p5 = scmp.lt.s32.totalorder %s980_s22, 1 }
  0x78   : > { %s1317_s10 = sshll.u32 %s263_s4, 3  ;;  %p535_p6 = scmp.ne.s32.totalorder %s976_s21, 0 }
  0x79   : > { %s1320_s18 = scalar_select %p267_p5, %s980_s22, 1 }
  0x7a   : > { %s265_s15 = scalar_lea.vmem [#allocation8], %s1317_s10  ;;  %273 = sbr.rel (%p535_p6) target bundleno = 129 (0x81), region = 44  ;;  %v1007_v0 = vmov (!%p535_p6), 0.0  }
  0x7b   : > { %s269_s9 = scalar_lea.vmem %s1441_s2, %s1320_s18  ;;  %274 = vst [vmem:[#allocation2] sm:$0xff] (!%p535_p6), %v1007_v0 }
  0x81 PF: > { %v277_v1 = vld [vmem:[%s1307_s28] sm:$0xff]  ;;  %v278_v2 = vld [vmem:[%s1307_s28 + $0x8] sm:$0xff]  ;;  %v1008_v3 = vmov 0.0|0.0   ;;  %vm1009_vm0 = vmmov 0   ;;  %v1010_v5 = vmov 0.0   ;;  %v279_v6 = vld [vmem:[%s1307_s28 + $0x10] sm:$0xff] }
  0x82   : > { %596 = vmatprep.subr.bf16.mxu0 %v1008_v3  ;;  %v597_v4 = vpack.c.bf16 %v278_v2, %v277_v1  ;;  %593 = vmatprep.mubr.msk.f32.mxu0 %vm1009_vm0, %v1010_v5  ;;  %v280_v7 = vld [vmem:[%s1307_s28 + $0x18] sm:$0xff]  ;;  %v281_v9 = vld [vmem:[%s1307_s28 + $0x20] sm:$0xff]  ;;  %v282_v10 = vld [vmem:[%s1307_s28 + $0x28] sm:$0xff]  ;;  %p536_p13 = scmp.ne.s32.totalorder %s976_s21, 3 }
  0x83   : > { %v600_v8 = vpack.c.bf16 %v280_v7, %v279_v6  ;;  %v603_v11 = vpack.c.bf16 %v282_v10, %v281_v9  ;;  %v283_v12 = vld [vmem:[%s1307_s28 + $0x30] sm:$0xff]  ;;  %v284_v13 = vld [vmem:[%s1307_s28 + $0x38] sm:$0xff]  ;;  %v285_v15 = vld [vmem:[%s1307_s28 + $0x40] sm:$0xff] }
  0x84   : > { %598 = vmatpush3.bf16.xpose.msra.mxu0 %v597_v4  ;;  %v606_v14 = vpack.c.bf16 %v284_v13, %v283_v12  ;;  %v286_v16 = vld [vmem:[%s1307_s28 + $0x48] sm:$0xff]  ;;  %v287_v18 = vld [vmem:[%s1307_s28 + $0x50] sm:$0xff]  ;;  %v288_v19 = vld [vmem:[%s1307_s28 + $0x58] sm:$0xff] }
  0x85   : > { %599 = vmatprep.subr.bf16.mxu0 %v1008_v3  ;;  %v609_v17 = vpack.c.bf16 %v286_v16, %v285_v15  ;;  %v612_v20 = vpack.c.bf16 %v288_v19, %v287_v18  ;;  %v289_v21 = vld [vmem:[%s1307_s28 + $0x60] sm:$0xff]  ;;  %v290_v22 = vld [vmem:[%s1307_s28 + $0x68] sm:$0xff]  ;;  %v291_v24 = vld [vmem:[%s1307_s28 + $0x70] sm:$0xff] }
  0x86   : > { %v615_v23 = vpack.c.bf16 %v290_v22, %v289_v21  ;;  %v292_v25 = vld [vmem:[%s1307_s28 + $0x78] sm:$0xff]  ;;  %v275_v28 = vld [vmem:[#allocation2] sm:$0xff] }
  0x87   : > { %v618_v26 = vpack.c.bf16 %v292_v25, %v291_v24  ;;  %v276_v27 = vld [vmem:[%s226_s30] sm:$0xff]  ;;  %v537_v33 = vld [vmem:[%s269_s9] ss:$0 sm:$0xff] (!%p536_p13) }
  0x8c   : > { %601 = vmatpush3.bf16.xpose.msra.mxu0 %v600_v8 }
  0x8d   : > { %602 = vmatprep.subr.bf16.mxu0 %v1008_v3 }
  0x94   : > { %604 = vmatpush3.bf16.xpose.msra.mxu0 %v603_v11 }
  0x95   : > { %605 = vmatprep.subr.bf16.mxu0 %v1008_v3 }
  0x9c   : > { %607 = vmatpush3.bf16.xpose.msra.mxu0 %v606_v14 }
  0x9d   : > { %608 = vmatprep.subr.bf16.mxu0 %v1008_v3 }
  0xa4   : > { %610 = vmatpush3.bf16.xpose.msra.mxu0 %v609_v17 }
  0xa5   : > { %611 = vmatprep.subr.bf16.mxu0 %v1008_v3 }
  0xac   : > { %613 = vmatpush3.bf16.xpose.msra.mxu0 %v612_v20 }
  0xad   : > { %614 = vmatprep.subr.bf16.mxu0 %v1008_v3 }
  0xb4   : > { %616 = vmatpush3.bf16.xpose.msra.mxu0 %v615_v23 }
  0xb5   : > { %617 = vmatprep.subr.bf16.mxu0 %v1008_v3 }
  0xbc   : > { %619 = vmatpush3.bf16.xpose.msra.mxu0 %v618_v26 }
  0xc3   : > { %594 = vmatmul.mubr.f32.vlgmr.msra.gmra.mrb[0].mxu0 %v276_v27 }
 0x193   : > { %368 = sbr.rel (%p536_p13) target bundleno = 420 (0x1a4), region = 48 }
 0x196   : > { %v359_v29 = vpop.f32.mrb[0].mxu0 }
 0x197   : > { %v363_v30 = vadd.f32 %v359_v29, %v275_v28  ;;  %v595_v31 = vpop.f32.mrb[1].mxu0 }
 0x199   : > { %364 = vst [vmem:[#allocation2] sm:$0xff] %v363_v30 }
 0x1a0   : > { %v369_v32 = vld [vmem:[#allocation2] sm:$0xff] }
 0x1a1   : > { %v377_v34 = vmul.f32 %v537_v33, %v369_v32 }
 0x1a3   : > { %378 = vst [vmem:[%s265_s15] sm:$0xff] %v377_v34 }
 0x1a4 PF: > { %s1482_s3 = sld [smem:[#allocation20_spill]]  ;;  %s539_s8 = sshll.u32 %s984_s23, 1 }
 0x1a5   : > { %s391_s21 = sadd.s32 %s980_s22, %s539_s8  ;;  %s395_s30 = sshll.u32 %s265_s15, 4  ;;  %s1358_s30 = int_to_ptr.vmem [resolvable:$true] %s395_s30 }
 0x1a6   : > { %s540_s14 = sshll.u32 %s391_s21, 7  ;;  %s1483_s28 = sld [smem:[#allocation22_spill]] }
 0x1a7   : > { %s380_s0 = scalar_lea.sflag [#allocation5], %s263_s4  ;;  %s834_s6 = scalar_lea.vmem %s1358_s30, 128 }
 0x1a8   : > { %p835_p8 = scmp.ne.s32.totalorder %s1358_s30, %s834_s6  ;;  %s1011_s22 = smov [#allocation8]  }
 0x1a9   : > { %s838_s23 = sshll.u32 %s1011_s22, 4  ;;  %s839_s23 = int_to_ptr.vmem [resolvable:$false] %s838_s23 }
 0x1aa   : > { %p1484_p1 = scmp.ne.s32.totalorder %s1482_s3, 0  ;;  %s840_s10 = scalar_lea.vmem %s839_s23, 256 }
 0x1ab   : > { %p841_p7 = scmp.lt.s32.totalorder %s1358_s30, %s839_s23  ;;  %p842_p11 = scmp.lt.s32.totalorder %s840_s10, %s834_s6 }
 0x1ac   : > { %s393_s18 = scalar_lea.hbm %s1483_s28, %s540_s14  ;;  %p836_p2 = pnand %p835_p8, %p1484_p1 }
 0x1ad   : > { %p843_p9 = por %p842_p11, %p841_p7 }
 0x1ae   : > { %p837_p10 = pneg %p836_p2 }
 0x1b0   : > { %p844_p3 = pnand %p843_p9, %p837_p10 }
 0x1b2   : > { %847 = shalt.err (!%p844_p3)
}
 0x1b3   : > { %s848_s9 = scalar_lea.hbm %s393_s18, 128  ;;  %s852_s29 = scalar_lea.hbm %s1483_s28, 512 }
 0x1b4   : > { %p849_p4 = scmp.ne.s32.totalorder %s393_s18, %s848_s9  ;;  %p853_p5 = scmp.lt.u32.totalorder %s393_s18, %s1483_s28 }
 0x1b5   : > { %p854_p6 = scmp.lt.u32.totalorder %s852_s29, %s848_s9  ;;  %p856_p8 = scmp.lt.u32.totalorder %s848_s9, %s393_s18 }
 0x1b6   : > { %p850_p0 = pnand %p849_p4, %p1484_p1 }
 0x1b7   : > { %p855_p13 = por %p854_p6, %p853_p5 }
 0x1b8   : > { %p851_p12 = pneg %p850_p0 }
 0x1b9   : > { %p857_p2 = por %p856_p8, %p855_p13 }
 0x1bb   : > { %p858_p10 = pnand %p857_p2, %p851_p12 }
 0x1bd   : > { %861 = shalt.err (!%p858_p10)
}
 0x1be   : > { %624 = dma.vmem_to_hbm [thread:$0]  (%p1484_p1), %s1358_s30, 128, %s393_s18, %s380_s0  }
 0x1bf PF: > { %s1485_s21 = sld [smem:[#allocation12_spill]]  ;;  %p638_p7 = scmp.ge.s32.totalorder %s1000_s27, 2 }
 0x1c0   : > { %p1486_p11 = scmp.ne.s32.totalorder %s1474_s5, 0 }
 0x1c2   : > { %p634_p9 = pnand %p638_p7, %p1486_p11 }
 0x1c5   : > { %s407_s14 = sand.u32 1, %s1485_s21  }
 0x1c6   : > { %s408_s7 = scalar_lea.sflag [#allocation5], %s407_s14 }
 0x1c7   : > { %935 = dma.done.wait (!%p634_p9), %s408_s7, 128  }
 0x1c8   : > { %937 = vsyncadd (!%p634_p9), %s408_s7, 4294967168  ;;  %s22_s27 = sadd.s32 1, %s1000_s27   ;;  %s1489_s3 = sld [smem:[#allocation13_spill]] }
 0x1c9   : > { %p1386_p3 = scmp.ge.s32.totalorder %s22_s27, 18   ;;  %s1490_s14 = sld [smem:[#allocation19_spill]] }
 0x1ca   : > { %s1491_s30 = sld [smem:[#allocation17_spill]]  ;;  %s1492_s0 = sld [smem:[#allocation18_spill]] }
 0x1cb   : > { %s1493_s5 = sld [smem:[#allocation14_spill]]  ;;  %s1494_s10 = sld [smem:[#allocation15_spill]] }
 0x1cc   : > { %s1495_s9 = sld [smem:[#allocation16_spill]]  ;;  %s1496_s12 = smov %s944_s13 }
 0x1cd   : > { %s1498_s15 = smov %s956_s16  ;;  %s1499_s16 = smov %s960_s17 }
 0x1ce   : > { %s1497_s13 = smov %s1489_s3  ;;  %s1501_s18 = smov %s968_s19 }
 0x1cf   : > { %s1502_s19 = smov %s972_s20  ;;  %s1504_s21 = smov %s988_s24 }
 0x1d0   : > { %s1500_s17 = smov %s1491_s30  ;;  %s1503_s20 = smov %s1492_s0 }
 0x1d1   : > { %s1505_s22 = smov %s992_s25  ;;  %s1506_s23 = smov %s996_s26 }
 0x1d2   : > { %s1507_s24 = smov %s1493_s5  ;;  %s1508_s25 = smov %s1494_s10 }
 0x1d3   : > { %s1509_s26 = smov %s1495_s9  ;;  %21 = sbr.rel (!%p1386_p3) target bundleno = 16 (0x10), region = 101 }
 0x1da   :  { %413 = vsyncpa [#allocation4], 1 }
 0x1db   :  { %415 = vsyncpa [#allocation4 + $0x1], 1 }
 0x1dc   :  { %416 = vsyncpa [#allocation7], 1 }
 0x1dd   :  { %418 = vsyncpa [#allocation7 + $0x1], 1 }
 0x1de   :  { %419 = vsyncpa [#allocation5], 1 }
 0x1df   :  { %421 = vsyncpa [#allocation5 + $0x1], 1 }

</bundles_post_ra>
